<compile_context>
chip_gen: v5e
topology: v5e:2x2
jax: 0.10.0
libtpu: 0.0.40
codegen_flags: <defaults>
</compile_context>

<pallas_src>
import functools

import jax
import jax.numpy as jnp
from jax.experimental import pallas as pl
from jax.experimental.pallas import tpu as pltpu

# ----------------------------- configuration -------------------------------
IN_FEATURES = 90
HIDDEN = (64, 48, 32, 24, 16)          # params['l1'..'l5']
OUT_FEATURES = 2
NUM_LAYERS = len(HIDDEN) + 1           # 5 hidden layers + output head
DIMS = (IN_FEATURES,) + HIDDEN + (OUT_FEATURES,)

LANE = 128                             # every feature dim zero-padded to this
BIAS_ROWS = 8                          # 6 bias rows padded to a full sublane tile


def _round_up(x, m):
    return (x + m - 1) // m * m


# ------------------------------- kernel ------------------------------------
def _mlp_kernel(x_ref, w_ref, b_ref, o_ref, xpad_ref):
    """One batch tile: pad features to 128 lanes in VMEM, then 6 fused matmuls."""
    cdt = xpad_ref.dtype

    # 90 -> 128 lane pad done on-chip (no padded copy of x in HBM).
    xpad_ref[...] = jnp.zeros_like(xpad_ref)
    xpad_ref[:, :IN_FEATURES] = x_ref[...]
    h = xpad_ref[...]

    for layer in range(NUM_LAYERS):
        acc = jnp.dot(h, w_ref[layer], preferred_element_type=jnp.float32)
        acc = acc + b_ref[layer:layer + 1, :]           # f32 bias, (1,128) bcast
        if layer < NUM_LAYERS - 1:
            h = jnp.maximum(acc, 0.0).astype(cdt)       # ReLU; dropout = id (eval)
        else:
            o_ref[...] = acc.astype(o_ref.dtype)        # output head, no activation


# --------------------------- parameter packing ------------------------------
def pack_params(weights, biases, compute_dtype=jnp.float32):
    """Pad + pack ONCE (outside the per-call path).

    weights[i]: [in_i, out_i] -> packed [NUM_LAYERS, 128, 128] (compute_dtype)
    biases[i]:  [out_i]       -> packed [8, 128] float32
    """
    w_packed = jnp.zeros((NUM_LAYERS, LANE, LANE), compute_dtype)
    b_packed = jnp.zeros((BIAS_ROWS, LANE), jnp.float32)
    for i, (w, b) in enumerate(zip(weights, biases)):
        w_packed = w_packed.at[i, : w.shape[0], : w.shape[1]].set(
            w.astype(compute_dtype))
        b_packed = b_packed.at[i, : b.shape[0]].set(b.astype(jnp.float32))
    return w_packed, b_packed


# ------------------------------- wrapper ------------------------------------
@functools.partial(jax.jit, static_argnames=("block_b",))
def mlp_forward(x, w_packed, b_packed, *, block_b=1024):
    """x: [B, 90]; w_packed: [6,128,128]; b_packed: [8,128] -> [B, 2] float32."""
    B = x.shape[0]
    cdt = w_packed.dtype

    tb = min(block_b, _round_up(B, 32))      # batch tile, sublane aligned (f32/bf16)
    b_pad = _round_up(B, tb)

    # Only the batch dim is padded (cheap); feature dim stays at 90.
    x_p = jnp.zeros((b_pad, IN_FEATURES), cdt).at[:B, :].set(x.astype(cdt))

    flops = 2 * b_pad * sum(a * b for a, b in zip(DIMS[:-1], DIMS[1:]))
    bytes_accessed = (x_p.size * x_p.dtype.itemsize
                      + b_pad * LANE * 4
                      + w_packed.size * w_packed.dtype.itemsize
                      + b_packed.size * 4)

    out_pad = pl.pallas_call(
        _mlp_kernel,
        out_shape=jax.ShapeDtypeStruct((b_pad, LANE), jnp.float32),
        grid_spec=pltpu.PrefetchScalarGridSpec(
            num_scalar_prefetch=0,
            grid=(b_pad // tb,),
            in_specs=[
                # streamed per grid step
                pl.BlockSpec((tb, IN_FEATURES), lambda i: (i, 0)),
                # constant index_map -> resident in VMEM across all steps
                pl.BlockSpec((NUM_LAYERS, LANE, LANE), lambda i: (0, 0, 0)),
                pl.BlockSpec((BIAS_ROWS, LANE), lambda i: (0, 0)),
            ],
            out_specs=pl.BlockSpec((tb, LANE), lambda i: (i, 0)),
            scratch_shapes=[pltpu.VMEM((tb, LANE), cdt)],
        ),
        compiler_params=pltpu.CompilerParams(
            dimension_semantics=("parallel",),   # megacore sharding on v7x
        ),
        cost_estimate=pl.CostEstimate(
            flops=flops, transcendentals=0, bytes_accessed=bytes_accessed),
    )(x_p, w_packed, b_packed)

    return out_pad[:B, :OUT_FEATURES]


# --------------------------- parameter init ---------------------------------
def init_params(key):
    """Deterministic PyTorch-style Linear init: U(-1/sqrt(fan_in), 1/sqrt(fan_in))."""
    weights, biases = [], []
    for i in range(NUM_LAYERS):
        fan_in, fan_out = DIMS[i], DIMS[i + 1]
        key, kw, kb = jax.random.split(key, 3)
        bound = 1.0 / jnp.sqrt(jnp.float32(fan_in))
        # stored as [in, out] (transpose of torch's [out, in]) so kernel does h @ W
        weights.append(jax.random.uniform(kw, (fan_in, fan_out), jnp.float32,
                                          -bound, bound))
        biases.append(jax.random.uniform(kb, (fan_out,), jnp.float32,
                                         -bound, bound))
    return weights, biases


# pure-JAX reference for sanity checking
def ref_forward(x, weights, biases):
    h = x
    for i, (w, b) in enumerate(zip(weights, biases)):
        h = h @ w + b
        if i < len(weights) - 1:
            h = jnp.maximum(h, 0.0)
    return h


if __name__ == "__main__":
    key = jax.random.PRNGKey(0)
    k_x, k_p = jax.random.split(key)

    B = 16
    x = jax.random.normal(k_x, (B, IN_FEATURES), jnp.float32)
    weights, biases = init_params(k_p)
    ref = ref_forward(x, weights, biases)

    # ---- f32 path (exact parity; v5e-friendly) ----
    w32, b32 = pack_params(weights, biases, jnp.float32)
    out32 = mlp_forward(x, w32, b32)
    jax.block_until_ready(out32)
    assert out32.shape == (B, OUT_FEATURES), out32.shape
    assert jnp.allclose(out32, ref, atol=1e-4, rtol=1e-4), "f32 mismatch vs reference"

    # ---- bf16-matmul path (v6e/v7x fast path; f32 accumulation) ----
    wbf, bbf = pack_params(weights, biases, jnp.bfloat16)
    outbf = mlp_forward(x, wbf, bbf)
    jax.block_until_ready(outbf)
    assert outbf.shape == (B, OUT_FEATURES), outbf.shape
    assert jnp.allclose(outbf, ref, atol=1e-1, rtol=1e-1), "bf16 mismatch vs reference"

    print("KERNEL_OK")
</pallas_src>

<mosaic_0001>
module attributes {stable_mosaic.version = 11 : i64} {
  func.func @_mlp_kernel(%arg0: i32, %arg1: memref<32x90xf32, #tpu.memory_space<vmem>>, %arg2: memref<6x128x128xf32, #tpu.memory_space<vmem>>, %arg3: memref<8x128xf32, #tpu.memory_space<vmem>>, %arg4: memref<32x128xf32, #tpu.memory_space<vmem>>, %arg5: memref<32x128xf32, #tpu.memory_space<vmem>>) attributes {dimension_semantics = [#tpu.dimension_semantics<parallel>], iteration_bounds = array<i64: 1>, scalar_prefetch = 0 : i64, scratch_operands = 1 : i64, tpu.core_type = #tpu.core_type<tc>, window_params = [{transform_indices = @transform_0, window_bounds = array<i64: 32, 90>}, {pipeline_mode = #tpu.pipeline_mode<synchronous>, transform_indices = @transform_1, window_bounds = array<i64: 6, 128, 128>}, {pipeline_mode = #tpu.pipeline_mode<synchronous>, transform_indices = @transform_2, window_bounds = array<i64: 8, 128>}, {transform_indices = @transform_3, window_bounds = array<i64: 32, 128>}]} {
    %cst = arith.constant 0.000000e+00 : f32
    %0 = vector.broadcast %cst : f32 to vector<32x128xf32>
    %c0 = arith.constant 0 : index
    %c0_0 = arith.constant 0 : index
    %1 = vector.load %arg5[%c0, %c0_0] : memref<32x128xf32, #tpu.memory_space<vmem>>, vector<32x128xf32>
    tpu.vector_store %arg5[%c0, %c0_0], %0 {strides = array<i32>} : memref<32x128xf32, #tpu.memory_space<vmem>>, vector<32x128xf32>,
    %c0_1 = arith.constant 0 : index
    %c0_2 = arith.constant 0 : index
    %2 = vector.load %arg1[%c0_1, %c0_2] : memref<32x90xf32, #tpu.memory_space<vmem>>, vector<32x90xf32>
    %c0_3 = arith.constant 0 : index
    %c0_4 = arith.constant 0 : index
    %3 = vector.load %arg5[%c0_3, %c0_4] : memref<32x128xf32, #tpu.memory_space<vmem>>, vector<32x90xf32>
    tpu.vector_store %arg5[%c0_3, %c0_4], %2 {strides = array<i32>} : memref<32x128xf32, #tpu.memory_space<vmem>>, vector<32x90xf32>,
    %c0_5 = arith.constant 0 : index
    %c0_6 = arith.constant 0 : index
    %4 = vector.load %arg5[%c0_5, %c0_6] : memref<32x128xf32, #tpu.memory_space<vmem>>, vector<32x128xf32>
    %c0_7 = arith.constant 0 : index
    %c0_8 = arith.constant 0 : index
    %c0_9 = arith.constant 0 : index
    %5 = vector.load %arg2[%c0_7, %c0_8, %c0_9] : memref<6x128x128xf32, #tpu.memory_space<vmem>>, vector<1x128x128xf32>
    %6 = vector.shape_cast %5 : vector<1x128x128xf32> to vector<128x128xf32>
    %cst_10 = arith.constant dense<0.000000e+00> : vector<32x128xf32>
    %7 = tpu.matmul %4, %6, %cst_10 {dimension_numbers = #tpu.dot_dimension_numbers<[1], [0], [0], [1], [0, 0, 1, 1], [], []>} : vector<32x128xf32>, vector<128x128xf32>, vector<32x128xf32> -> vector<32x128xf32>
    %c0_11 = arith.constant 0 : index
    %c0_12 = arith.constant 0 : index
    %8 = vector.load %arg3[%c0_11, %c0_12] : memref<8x128xf32, #tpu.memory_space<vmem>>, vector<1x128xf32>
    %9 = vector.broadcast %8 : vector<1x128xf32> to vector<32x128xf32>
    %10 = arith.addf %7, %9 : vector<32x128xf32>
    %cst_13 = arith.constant 0.000000e+00 : f32
    %11 = vector.broadcast %cst_13 : f32 to vector<32x128xf32>
    %12 = arith.maximumf %10, %11 : vector<32x128xf32>
    %c1 = arith.constant 1 : index
    %c0_14 = arith.constant 0 : index
    %c0_15 = arith.constant 0 : index
    %13 = vector.load %arg2[%c1, %c0_14, %c0_15] : memref<6x128x128xf32, #tpu.memory_space<vmem>>, vector<1x128x128xf32>
    %14 = vector.shape_cast %13 : vector<1x128x128xf32> to vector<128x128xf32>
    %cst_16 = arith.constant dense<0.000000e+00> : vector<32x128xf32>
    %15 = tpu.matmul %12, %14, %cst_16 {dimension_numbers = #tpu.dot_dimension_numbers<[1], [0], [0], [1], [0, 0, 1, 1], [], []>} : vector<32x128xf32>, vector<128x128xf32>, vector<32x128xf32> -> vector<32x128xf32>
    %c1_17 = arith.constant 1 : index
    %c0_18 = arith.constant 0 : index
    %16 = vector.load %arg3[%c1_17, %c0_18] : memref<8x128xf32, #tpu.memory_space<vmem>>, vector<1x128xf32>
    %17 = vector.broadcast %16 : vector<1x128xf32> to vector<32x128xf32>
    %18 = arith.addf %15, %17 : vector<32x128xf32>
    %cst_19 = arith.constant 0.000000e+00 : f32
    %19 = vector.broadcast %cst_19 : f32 to vector<32x128xf32>
    %20 = arith.maximumf %18, %19 : vector<32x128xf32>
    %c2 = arith.constant 2 : index
    %c0_20 = arith.constant 0 : index
    %c0_21 = arith.constant 0 : index
    %21 = vector.load %arg2[%c2, %c0_20, %c0_21] : memref<6x128x128xf32, #tpu.memory_space<vmem>>, vector<1x128x128xf32>
    %22 = vector.shape_cast %21 : vector<1x128x128xf32> to vector<128x128xf32>
    %cst_22 = arith.constant dense<0.000000e+00> : vector<32x128xf32>
    %23 = tpu.matmul %20, %22, %cst_22 {dimension_numbers = #tpu.dot_dimension_numbers<[1], [0], [0], [1], [0, 0, 1, 1], [], []>} : vector<32x128xf32>, vector<128x128xf32>, vector<32x128xf32> -> vector<32x128xf32>
    %c2_23 = arith.constant 2 : index
    %c0_24 = arith.constant 0 : index
    %24 = vector.load %arg3[%c2_23, %c0_24] : memref<8x128xf32, #tpu.memory_space<vmem>>, vector<1x128xf32>
    %25 = vector.broadcast %24 : vector<1x128xf32> to vector<32x128xf32>
    %26 = arith.addf %23, %25 : vector<32x128xf32>
    %cst_25 = arith.constant 0.000000e+00 : f32
    %27 = vector.broadcast %cst_25 : f32 to vector<32x128xf32>
    %28 = arith.maximumf %26, %27 : vector<32x128xf32>
    %c3 = arith.constant 3 : index
    %c0_26 = arith.constant 0 : index
    %c0_27 = arith.constant 0 : index
    %29 = vector.load %arg2[%c3, %c0_26, %c0_27] : memref<6x128x128xf32, #tpu.memory_space<vmem>>, vector<1x128x128xf32>
    %30 = vector.shape_cast %29 : vector<1x128x128xf32> to vector<128x128xf32>
    %cst_28 = arith.constant dense<0.000000e+00> : vector<32x128xf32>
    %31 = tpu.matmul %28, %30, %cst_28 {dimension_numbers = #tpu.dot_dimension_numbers<[1], [0], [0], [1], [0, 0, 1, 1], [], []>} : vector<32x128xf32>, vector<128x128xf32>, vector<32x128xf32> -> vector<32x128xf32>
    %c3_29 = arith.constant 3 : index
    %c0_30 = arith.constant 0 : index
    %32 = vector.load %arg3[%c3_29, %c0_30] : memref<8x128xf32, #tpu.memory_space<vmem>>, vector<1x128xf32>
    %33 = vector.broadcast %32 : vector<1x128xf32> to vector<32x128xf32>
    %34 = arith.addf %31, %33 : vector<32x128xf32>
    %cst_31 = arith.constant 0.000000e+00 : f32
    %35 = vector.broadcast %cst_31 : f32 to vector<32x128xf32>
    %36 = arith.maximumf %34, %35 : vector<32x128xf32>
    %c4 = arith.constant 4 : index
    %c0_32 = arith.constant 0 : index
    %c0_33 = arith.constant 0 : index
    %37 = vector.load %arg2[%c4, %c0_32, %c0_33] : memref<6x128x128xf32, #tpu.memory_space<vmem>>, vector<1x128x128xf32>
    %38 = vector.shape_cast %37 : vector<1x128x128xf32> to vector<128x128xf32>
    %cst_34 = arith.constant dense<0.000000e+00> : vector<32x128xf32>
    %39 = tpu.matmul %36, %38, %cst_34 {dimension_numbers = #tpu.dot_dimension_numbers<[1], [0], [0], [1], [0, 0, 1, 1], [], []>} : vector<32x128xf32>, vector<128x128xf32>, vector<32x128xf32> -> vector<32x128xf32>
    %c4_35 = arith.constant 4 : index
    %c0_36 = arith.constant 0 : index
    %40 = vector.load %arg3[%c4_35, %c0_36] : memref<8x128xf32, #tpu.memory_space<vmem>>, vector<1x128xf32>
    %41 = vector.broadcast %40 : vector<1x128xf32> to vector<32x128xf32>
    %42 = arith.addf %39, %41 : vector<32x128xf32>
    %cst_37 = arith.constant 0.000000e+00 : f32
    %43 = vector.broadcast %cst_37 : f32 to vector<32x128xf32>
    %44 = arith.maximumf %42, %43 : vector<32x128xf32>
    %c5 = arith.constant 5 : index
    %c0_38 = arith.constant 0 : index
    %c0_39 = arith.constant 0 : index
    %45 = vector.load %arg2[%c5, %c0_38, %c0_39] : memref<6x128x128xf32, #tpu.memory_space<vmem>>, vector<1x128x128xf32>
    %46 = vector.shape_cast %45 : vector<1x128x128xf32> to vector<128x128xf32>
    %cst_40 = arith.constant dense<0.000000e+00> : vector<32x128xf32>
    %47 = tpu.matmul %44, %46, %cst_40 {dimension_numbers = #tpu.dot_dimension_numbers<[1], [0], [0], [1], [0, 0, 1, 1], [], []>} : vector<32x128xf32>, vector<128x128xf32>, vector<32x128xf32> -> vector<32x128xf32>
    %c5_41 = arith.constant 5 : index
    %c0_42 = arith.constant 0 : index
    %48 = vector.load %arg3[%c5_41, %c0_42] : memref<8x128xf32, #tpu.memory_space<vmem>>, vector<1x128xf32>
    %49 = vector.broadcast %48 : vector<1x128xf32> to vector<32x128xf32>
    %50 = arith.addf %47, %49 : vector<32x128xf32>
    %c0_43 = arith.constant 0 : index
    %c0_44 = arith.constant 0 : index
    %51 = vector.load %arg4[%c0_43, %c0_44] : memref<32x128xf32, #tpu.memory_space<vmem>>, vector<32x128xf32>
    tpu.vector_store %arg4[%c0_43, %c0_44], %50 {strides = array<i32>} : memref<32x128xf32, #tpu.memory_space<vmem>>, vector<32x128xf32>,
    return
  }
  func.func @transform_0(%arg0: i32) -> (i32, i32) {
    %c0_i32 = arith.constant 0 : i32
    %c0_i32_0 = arith.constant 0 : i32
    return %arg0, %c0_i32 : i32, i32
  }
  func.func @transform_1(%arg0: i32) -> (i32, i32, i32) {
    %c0_i32 = arith.constant 0 : i32
    %c0_i32_0 = arith.constant 0 : i32
    %c0_i32_1 = arith.constant 0 : i32
    %c0_i32_2 = arith.constant 0 : i32
    return %c0_i32, %c0_i32_0, %c0_i32_1 : i32, i32, i32
  }
  func.func @transform_2(%arg0: i32) -> (i32, i32) {
    %c0_i32 = arith.constant 0 : i32
    %c0_i32_0 = arith.constant 0 : i32
    %c0_i32_1 = arith.constant 0 : i32
    return %c0_i32, %c0_i32_0 : i32, i32
  }
  func.func @transform_3(%arg0: i32) -> (i32, i32) {
    %c0_i32 = arith.constant 0 : i32
    %c0_i32_0 = arith.constant 0 : i32
    return %arg0, %c0_i32 : i32, i32
  }
}

</mosaic_0001>

<bundles_post_ra>
// kernel: mlp_forward.1
= control target key start
LH: loop header
LB: loop body
LE: loop exit
PB: predicated region body
PF: predicated region fallthrough
CT: control target
= control target key end

     0   :  { %8 = vsyncpa [#allocation4], 0  ;;  %s431_s15 = smov [#allocation3]   ;;  %s432_s17 = smov 128   ;;  %s504_s0 = inlined_call_operand.vmem [shape: f32[32,90], index: 0, kind: input, shape index: {}]   ;;  %s505_s1 = inlined_call_operand.hbm [shape: f32[6,128,128], index: 1, kind: input, shape index: {}]   ;;  %s506_s2 = inlined_call_operand.vmem [shape: f32[8,128], index: 2, kind: input, shape index: {}]   ;;  %s507_s3 = inlined_call_operand.vmem [shape: f32[32,128], index: 3, kind: output, shape index: {}]  }
   0x1   :  { %s15_s14 = sshll.u32 %s505_s1, 4  ;;  %s17_s16 = sshll.u32 %s431_s15, 4  ;;  %s16_s14 = int_to_ptr.hbm [resolvable:$true] %s15_s14  ;;  %s18_s16 = int_to_ptr.vmem [resolvable:$true] %s17_s16 }
   0x2   :  { %s433_s18 = smov 8  }
   0x3   :  { %23 = dma.hbm_to_vmem [thread:$0]  %s16_s14, 12288, %s18_s16, [#allocation4], %s432_s17, %s432_s17, %s433_s18  }
   0x4   :  { %429 = dma.done.wait [#allocation4], 12288  }
   0x5   :  { %430 = vsyncadd [#allocation4], 4294955008  ;;  %v434_v0 = vmov 0.0   ;;  %v62_v1 = vld [vmem:[#allocation3 + $0x78] sm:$0xff]  ;;  %v61_v2 = vld [vmem:[#allocation3 + $0x70] sm:$0xff]  ;;  %vm38_vm0 = vcmask 736256  }
   0x6   :  { %30 = vst [vmem:[#allocation2] sm:$0xff] %v434_v0  ;;  %65 = vmatpush.msra.mxu0 %v62_v1  ;;  %v60_v3 = vld [vmem:[#allocation3 + $0x68] sm:$0xff]  ;;  %v59_v4 = vld [vmem:[#allocation3 + $0x60] sm:$0xff]  ;;  %v58_v7 = vld [vmem:[#allocation3 + $0x58] sm:$0xff] }
   0x7   :  { %31 = vst [vmem:[#allocation2 + $0x8] sm:$0xff] %v434_v0  ;;  %v34_v5 = vld [vmem:[%s504_s0] sm:$0xff]  ;;  %v35_v6 = vld [vmem:[%s504_s0 + $0x8] sm:$0xff]  ;;  %v36_v8 = vld [vmem:[%s504_s0 + $0x10] sm:$0xff] }
   0x8   :  { %32 = vst [vmem:[#allocation2 + $0x10] sm:$0xff] %v434_v0  ;;  %66 = vmatpush.msra.mxu0 %v61_v2  ;;  %v57_v9 = vld [vmem:[#allocation3 + $0x50] sm:$0xff]  ;;  %v56_v10 = vld [vmem:[#allocation3 + $0x48] sm:$0xff]  ;;  %v55_v11 = vld [vmem:[#allocation3 + $0x40] sm:$0xff] }
   0x9   :  { %33 = vst [vmem:[#allocation2 + $0x18] sm:$0xff] %v434_v0  ;;  %v54_v12 = vld [vmem:[#allocation3 + $0x38] sm:$0xff]  ;;  %v53_v14 = vld [vmem:[#allocation3 + $0x30] sm:$0xff]  ;;  %v52_v15 = vld [vmem:[#allocation3 + $0x28] sm:$0xff] }
   0xa   :  { %67 = vmatpush.msra.mxu0 %v60_v3  ;;  %39 = vst.msk [vmem:[#allocation2] sm:$0xff] %vm38_vm0, %v34_v5  ;;  %v37_v13 = vld [vmem:[%s504_s0 + $0x18] sm:$0xff]  ;;  %v51_v16 = vld [vmem:[#allocation3 + $0x20] sm:$0xff]  ;;  %v49_v18 = vld [vmem:[#allocation3 + $0x10] sm:$0xff] }
   0xb   :  { %40 = vst.msk [vmem:[#allocation2 + $0x8] sm:$0xff] %vm38_vm0, %v35_v6  ;;  %v50_v17 = vld [vmem:[#allocation3 + $0x18] sm:$0xff]  ;;  %v113_v20 = vld [vmem:[#allocation3 + $0xf0] sm:$0xff]  ;;  %v48_v21 = vld [vmem:[#allocation3 + $0x8] sm:$0xff] }
   0xc   :  { %68 = vmatpush.msra.mxu0 %v59_v4  ;;  %41 = vst.msk [vmem:[#allocation2 + $0x10] sm:$0xff] %vm38_vm0, %v36_v8  ;;  %v114_v19 = vld [vmem:[#allocation3 + $0xf8] sm:$0xff]  ;;  %v112_v22 = vld [vmem:[#allocation3 + $0xe8] sm:$0xff]  ;;  %v47_v23 = vld [vmem:[#allocation3] sm:$0xff] }
   0xd   :  { %42 = vst.msk [vmem:[#allocation2 + $0x18] sm:$0xff] %vm38_vm0, %v37_v13  ;;  %117 = vmatpush.msra.mxu1 %v114_v19  ;;  %v111_v24 = vld [vmem:[#allocation3 + $0xe0] sm:$0xff]  ;;  %v110_v26 = vld [vmem:[#allocation3 + $0xd8] sm:$0xff]  ;;  %v109_v27 = vld [vmem:[#allocation3 + $0xd0] sm:$0xff] }
   0xe   :  { %69 = vmatpush.msra.mxu0 %v58_v7  ;;  %v108_v28 = vld [vmem:[#allocation3 + $0xc8] sm:$0xff]  ;;  %v107_v29 = vld [vmem:[#allocation3 + $0xc0] sm:$0xff]  ;;  %v106_v31 = vld [vmem:[#allocation3 + $0xb8] sm:$0xff] }
   0xf   :  { %118 = vmatpush.msra.mxu1 %v113_v20  ;;  %v105_v32 = vld [vmem:[#allocation3 + $0xb0] sm:$0xff]  ;;  %v104_v33 = vld [vmem:[#allocation3 + $0xa8] sm:$0xff]  ;;  %v103_v34 = vld [vmem:[#allocation3 + $0xa0] sm:$0xff] }
  0x10   :  { %70 = vmatpush.msra.mxu0 %v57_v9  ;;  %v102_v36 = vld [vmem:[#allocation3 + $0x98] sm:$0xff]  ;;  %v101_v38 = vld [vmem:[#allocation3 + $0x90] sm:$0xff]  ;;  %v100_v39 = vld [vmem:[#allocation3 + $0x88] sm:$0xff] }
  0x11   :  { %v43_v25 = vld [vmem:[#allocation2] sm:$0xff]  ;;  %119 = vmatpush.msra.mxu1 %v112_v22  ;;  %v166_v42 = vld [vmem:[#allocation3 + $0x178] sm:$0xff]  ;;  %v165_v43 = vld [vmem:[#allocation3 + $0x170] sm:$0xff] }
  0x12   :  { %71 = vmatpush.msra.mxu0 %v56_v10  ;;  %v44_v30 = vld [vmem:[#allocation2 + $0x8] sm:$0xff]  ;;  %v99_v40 = vld [vmem:[#allocation3 + $0x80] sm:$0xff]  ;;  %169 = vmatpush.msra.mxu2 %v166_v42  ;;  %v162_v49 = vld [vmem:[#allocation3 + $0x158] sm:$0xff] }
  0x13   :  { %120 = vmatpush.msra.mxu1 %v111_v24  ;;  %v45_v35 = vld [vmem:[#allocation2 + $0x10] sm:$0xff]  ;;  %v399_v41 = vld [vmem:[%s506_s2] ss:$0 sm:$0xff]  ;;  %v164_v44 = vld [vmem:[#allocation3 + $0x168] sm:$0xff] }
  0x14   :  { %72 = vmatpush.msra.mxu0 %v55_v11  ;;  %v46_v37 = vld [vmem:[#allocation2 + $0x18] sm:$0xff]  ;;  %170 = vmatpush.msra.mxu2 %v165_v43  ;;  %v163_v47 = vld [vmem:[#allocation3 + $0x160] sm:$0xff]  ;;  %v161_v50 = vld [vmem:[#allocation3 + $0x150] sm:$0xff] }
  0x15   :  { %121 = vmatpush.msra.mxu1 %v110_v26  ;;  %v160_v51 = vld [vmem:[#allocation3 + $0x148] sm:$0xff]  ;;  %v159_v54 = vld [vmem:[#allocation3 + $0x140] sm:$0xff]  ;;  %v158_v56 = vld [vmem:[#allocation3 + $0x138] sm:$0xff] }
  0x16   :  { %73 = vmatpush.msra.mxu0 %v54_v12  ;;  %171 = vmatpush.msra.mxu2 %v164_v44  ;;  %v157_v57 = vld [vmem:[#allocation3 + $0x130] sm:$0xff]  ;;  %v156_v58 = vld [vmem:[#allocation3 + $0x128] sm:$0xff]  ;;  %v155_v61 = vld [vmem:[#allocation3 + $0x120] sm:$0xff] }
  0x17   :  { %122 = vmatpush.msra.mxu1 %v109_v27  ;;  %v154_v63 = vld [vmem:[#allocation3 + $0x118] sm:$0xff]  ;;  %v153_v3 = vld [vmem:[#allocation3 + $0x110] sm:$0xff]  ;;  %v152_v4 = vld [vmem:[#allocation3 + $0x108] sm:$0xff] }
  0x18   :  { %74 = vmatpush.msra.mxu0 %v53_v14  ;;  %172 = vmatpush.msra.mxu2 %v163_v47  ;;  %v151_v5 = vld [vmem:[#allocation3 + $0x100] sm:$0xff]  ;;  %v218_v7 = vld [vmem:[#allocation3 + $0x1f8] sm:$0xff]  ;;  %v217_v8 = vld [vmem:[#allocation3 + $0x1f0] sm:$0xff] }
  0x19   :  { %123 = vmatpush.msra.mxu1 %v108_v28  ;;  %v400_v6 = vld [vmem:[%s506_s2 + $0x1] ss:$0 sm:$0xff]  ;;  %221 = vmatpush.msra.mxu3 %v218_v7  ;;  %v216_v9 = vld [vmem:[#allocation3 + $0x1e8] sm:$0xff]  ;;  %v214_v14 = vld [vmem:[#allocation3 + $0x1d8] sm:$0xff] }
  0x1a   :  { %75 = vmatpush.msra.mxu0 %v52_v15  ;;  %173 = vmatpush.msra.mxu2 %v162_v49  ;;  %v215_v12 = vld [vmem:[#allocation3 + $0x1e0] sm:$0xff]  ;;  %v213_v15 = vld [vmem:[#allocation3 + $0x1d0] sm:$0xff]  ;;  %v206_v28 = vld [vmem:[#allocation3 + $0x198] sm:$0xff] }
  0x1b   :  { %124 = vmatpush.msra.mxu1 %v107_v29  ;;  %222 = vmatpush.msra.mxu3 %v217_v8  ;;  %v211_v19 = vld [vmem:[#allocation3 + $0x1c0] sm:$0xff]  ;;  %v209_v22 = vld [vmem:[#allocation3 + $0x1b0] sm:$0xff]  ;;  %v266_v43 = vld [vmem:[#allocation3 + $0x258] sm:$0xff] }
  0x1c   :  { %76 = vmatpush.msra.mxu0 %v51_v16  ;;  %174 = vmatpush.msra.mxu2 %v161_v50  ;;  %v212_v16 = vld [vmem:[#allocation3 + $0x1c8] sm:$0xff]  ;;  %v207_v26 = vld [vmem:[#allocation3 + $0x1a0] sm:$0xff]  ;;  %v265_v44 = vld [vmem:[#allocation3 + $0x250] sm:$0xff] }
  0x1d   :  { %125 = vmatpush.msra.mxu1 %v106_v31  ;;  %223 = vmatpush.msra.mxu3 %v216_v9  ;;  %v262_v50 = vld [vmem:[#allocation3 + $0x238] sm:$0xff]  ;;  %v317_v9 = vld [vmem:[#allocation3 + $0x2d0] sm:$0xff] }
  0x1e   :  { %77 = vmatpush.msra.mxu0 %v50_v17  ;;  %175 = vmatpush.msra.mxu2 %v160_v51  ;;  %v261_v51 = vld [vmem:[#allocation3 + $0x230] sm:$0xff]  ;;  %v318_v8 = vld [vmem:[#allocation3 + $0x2d8] sm:$0xff] }
  0x1f   :  { %126 = vmatpush.msra.mxu1 %v105_v32  ;;  %224 = vmatpush.msra.mxu3 %v215_v12  ;;  %v205_v32 = vld [vmem:[#allocation3 + $0x190] sm:$0xff] }
  0x20   :  { %78 = vmatpush.msra.mxu0 %v49_v18  ;;  %176 = vmatpush.msra.mxu2 %v159_v54 }
  0x21   :  { %127 = vmatpush.msra.mxu1 %v104_v33  ;;  %225 = vmatpush.msra.mxu3 %v214_v14  ;;  %v204_v33 = vld [vmem:[#allocation3 + $0x188] sm:$0xff] }
  0x22   :  { %79 = vmatpush.msra.mxu0 %v48_v21  ;;  %177 = vmatpush.msra.mxu2 %v158_v56  ;;  %v210_v21 = vld [vmem:[#allocation3 + $0x1b8] sm:$0xff] }
  0x23   :  { %128 = vmatpush.msra.mxu1 %v103_v34  ;;  %226 = vmatpush.msra.mxu3 %v213_v15  ;;  %v203_v34 = vld [vmem:[#allocation3 + $0x180] sm:$0xff]  ;;  %v314_v15 = vld [vmem:[#allocation3 + $0x2b8] sm:$0xff] }
  0x24   :  { %80 = vmatpush.msra.mxu0 %v47_v23  ;;  %178 = vmatpush.msra.mxu2 %v157_v57  ;;  %v208_v23 = vld [vmem:[#allocation3 + $0x1a8] sm:$0xff]  ;;  %v258_v57 = vld [vmem:[#allocation3 + $0x218] sm:$0xff] }
  0x25   :  { %81 = vmatmul.f32.vlgmr.msra.gmra.mxu0 %v43_v25  ;;  %129 = vmatpush.msra.mxu1 %v102_v36  ;;  %v270_v36 = vld [vmem:[#allocation3 + $0x278] sm:$0xff] }
  0x26   :  { %179 = vmatpush.msra.mxu2 %v156_v58  ;;  %227 = vmatpush.msra.mxu3 %v212_v16  ;;  %v313_v16 = vld [vmem:[#allocation3 + $0x2b0] sm:$0xff] }
  0x27   :  { %130 = vmatpush.msra.mxu1 %v101_v38  ;;  %273 = vmatpush.msrb.mxu0 %v270_v36  ;;  %v268_v38 = vld [vmem:[#allocation3 + $0x268] sm:$0xff] }
  0x28   :  { %180 = vmatpush.msra.mxu2 %v155_v61  ;;  %228 = vmatpush.msra.mxu3 %v211_v19  ;;  %v257_v61 = vld [vmem:[#allocation3 + $0x210] sm:$0xff] }
  0x29   :  { %131 = vmatpush.msra.mxu1 %v100_v39 }
  0x2a   :  { %181 = vmatpush.msra.mxu2 %v154_v63  ;;  %229 = vmatpush.msra.mxu3 %v210_v21  ;;  %v255_v63 = vld [vmem:[#allocation3 + $0x200] sm:$0xff] }
  0x2b   :  { %132 = vmatpush.msra.mxu1 %v99_v40 }
  0x2c   :  { %182 = vmatpush.msra.mxu2 %v153_v3  ;;  %230 = vmatpush.msra.mxu3 %v209_v22  ;;  %v320_v3 = vld [vmem:[#allocation3 + $0x2e8] sm:$0xff]  ;;  %v310_v22 = vld [vmem:[#allocation3 + $0x298] sm:$0xff] }
  0x2d   :  { %84 = vmatmul.f32.gmra.mxu0 %v44_v30 }
  0x2e   :  { %183 = vmatpush.msra.mxu2 %v152_v4  ;;  %231 = vmatpush.msra.mxu3 %v208_v23 }
  0x30   :  { %184 = vmatpush.msra.mxu2 %v151_v5  ;;  %232 = vmatpush.msra.mxu3 %v207_v26  ;;  %v309_v26 = vld [vmem:[#allocation3 + $0x290] sm:$0xff] }
  0x32   :  { %233 = vmatpush.msra.mxu3 %v206_v28  ;;  %363 = vmatpush.msrb.mxu2 %v270_v36  ;;  %v307_v28 = vld [vmem:[#allocation3 + $0x280] sm:$0xff] }
  0x34   :  { %234 = vmatpush.msra.mxu3 %v205_v32 }
  0x35   :  { %87 = vmatmul.f32.gmra.mxu0 %v45_v35  ;;  %v401_v35 = vld [vmem:[%s506_s2 + $0x2] ss:$0 sm:$0xff] }
  0x36   :  { %235 = vmatpush.msra.mxu3 %v204_v33 }
  0x38   :  { %236 = vmatpush.msra.mxu3 %v203_v34 }
  0x3d   :  { %90 = vmatmul.f32.gmra.mxu0 %v46_v37  ;;  %v269_v37 = vld [vmem:[#allocation3 + $0x270] sm:$0xff] }
  0x3e   :  { %274 = vmatpush.msrb.mxu0 %v269_v37  ;;  %364 = vmatpush.msrb.mxu2 %v269_v37 }
  0x40   :  { %275 = vmatpush.msrb.mxu0 %v268_v38  ;;  %365 = vmatpush.msrb.mxu2 %v268_v38 }
  0xa2   :  { %v82_v45 = vpop.f32.mrf.mxu0 }
  0xa3   :  { %v83_v46 = vadd.f32 %v399_v41, %v82_v45  ;;  %v264_v45 = vld [vmem:[#allocation3 + $0x248] sm:$0xff] }
  0xa5   :  { %v94_v48 = vmax.f32 %v83_v46, 0.0 }
  0xa7   :  { %133 = vmatmul.f32.vlgmr.msra.gmra.mxu1 %v94_v48  ;;  %v263_v48 = vld [vmem:[#allocation3 + $0x240] sm:$0xff] }
  0xaa   :  { %v85_v52 = vpop.f32.mrf.mxu0 }
  0xab   :  { %v86_v53 = vadd.f32 %v399_v41, %v85_v52  ;;  %v260_v52 = vld [vmem:[#allocation3 + $0x228] sm:$0xff] }
  0xad   :  { %v95_v55 = vmax.f32 %v86_v53, 0.0 }
  0xaf   :  { %136 = vmatmul.f32.gmra.mxu1 %v95_v55  ;;  %v259_v55 = vld [vmem:[#allocation3 + $0x220] sm:$0xff] }
  0xb2   :  { %v88_v59 = vpop.f32.mrf.mxu0 }
  0xb3   :  { %v89_v60 = vadd.f32 %v399_v41, %v88_v59 }
  0xb5   :  { %v96_v62 = vmax.f32 %v89_v60, 0.0 }
  0xb7   :  { %139 = vmatmul.f32.gmra.mxu1 %v96_v62  ;;  %v256_v62 = vld [vmem:[#allocation3 + $0x208] sm:$0xff] }
  0xba   :  { %v91_v0 = vpop.f32.mrf.mxu0 }
  0xbb   :  { %v92_v1 = vadd.f32 %v399_v41, %v91_v0  ;;  %v267_v41 = vld [vmem:[#allocation3 + $0x260] sm:$0xff] }
  0xbc   :  { %276 = vmatpush.msrb.mxu0 %v267_v41  ;;  %366 = vmatpush.msrb.mxu2 %v267_v41  ;;  %v402_v0 = vld [vmem:[%s506_s2 + $0x3] ss:$0 sm:$0xff] }
  0xbd   :  { %v97_v2 = vmax.f32 %v92_v1, 0.0  ;;  %v322_v1 = vld [vmem:[#allocation3 + $0x2f8] sm:$0xff] }
  0xbe   :  { %277 = vmatpush.msrb.mxu0 %v266_v43  ;;  %367 = vmatpush.msrb.mxu2 %v266_v43 }
  0xbf   :  { %142 = vmatmul.f32.gmra.mxu1 %v97_v2  ;;  %v321_v2 = vld [vmem:[#allocation3 + $0x2f0] sm:$0xff]  ;;  %379 = vmatpush.msrb.mxu3 %v322_v1 }
  0xc0   :  { %278 = vmatpush.msrb.mxu0 %v265_v44  ;;  %368 = vmatpush.msrb.mxu2 %v265_v44 }
  0xc1   :  { %325 = vmatpush.msrb.mxu1 %v322_v1  ;;  %380 = vmatpush.msrb.mxu3 %v321_v2 }
  0xc2   :  { %279 = vmatpush.msrb.mxu0 %v264_v45  ;;  %369 = vmatpush.msrb.mxu2 %v264_v45 }
  0xc3   :  { %326 = vmatpush.msrb.mxu1 %v321_v2  ;;  %381 = vmatpush.msrb.mxu3 %v320_v3 }
  0xc4   :  { %280 = vmatpush.msrb.mxu0 %v263_v48  ;;  %370 = vmatpush.msrb.mxu2 %v263_v48 }
  0xc5   :  { %327 = vmatpush.msrb.mxu1 %v320_v3 }
  0xc6   :  { %281 = vmatpush.msrb.mxu0 %v262_v50  ;;  %371 = vmatpush.msrb.mxu2 %v262_v50 }
  0xc8   :  { %282 = vmatpush.msrb.mxu0 %v261_v51  ;;  %372 = vmatpush.msrb.mxu2 %v261_v51 }
  0xca   :  { %283 = vmatpush.msrb.mxu0 %v260_v52  ;;  %373 = vmatpush.msrb.mxu2 %v260_v52 }
  0xcc   :  { %284 = vmatpush.msrb.mxu0 %v259_v55  ;;  %374 = vmatpush.msrb.mxu2 %v259_v55 }
  0xce   :  { %285 = vmatpush.msrb.mxu0 %v258_v57  ;;  %375 = vmatpush.msrb.mxu2 %v258_v57 }
  0xd0   :  { %286 = vmatpush.msrb.mxu0 %v257_v61  ;;  %376 = vmatpush.msrb.mxu2 %v257_v61 }
  0xd2   :  { %287 = vmatpush.msrb.mxu0 %v256_v62  ;;  %377 = vmatpush.msrb.mxu2 %v256_v62 }
  0xd4   :  { %288 = vmatpush.msrb.mxu0 %v255_v63  ;;  %378 = vmatpush.msrb.mxu2 %v255_v63 }
 0x124   :  { %v134_v10 = vpop.f32.mrf.mxu1 }
 0x125   :  { %v135_v11 = vadd.f32 %v400_v6, %v134_v10  ;;  %v316_v10 = vld [vmem:[#allocation3 + $0x2c8] sm:$0xff] }
 0x127   :  { %v146_v13 = vmax.f32 %v135_v11, 0.0 }
 0x129   :  { %185 = vmatmul.f32.vlgmr.msra.gmra.mxu2 %v146_v13  ;;  %v315_v13 = vld [vmem:[#allocation3 + $0x2c0] sm:$0xff] }
 0x12c   :  { %v137_v17 = vpop.f32.mrf.mxu1 }
 0x12d   :  { %v138_v18 = vadd.f32 %v400_v6, %v137_v17  ;;  %v312_v17 = vld [vmem:[#allocation3 + $0x2a8] sm:$0xff] }
 0x12f   :  { %v147_v20 = vmax.f32 %v138_v18, 0.0 }
 0x131   :  { %188 = vmatmul.f32.gmra.mxu2 %v147_v20  ;;  %v311_v20 = vld [vmem:[#allocation3 + $0x2a0] sm:$0xff] }
 0x134   :  { %v140_v24 = vpop.f32.mrf.mxu1 }
 0x135   :  { %v141_v25 = vadd.f32 %v400_v6, %v140_v24 }
 0x137   :  { %v148_v27 = vmax.f32 %v141_v25, 0.0 }
 0x139   :  { %191 = vmatmul.f32.gmra.mxu2 %v148_v27  ;;  %v308_v27 = vld [vmem:[#allocation3 + $0x288] sm:$0xff] }
 0x13c   :  { %v143_v29 = vpop.f32.mrf.mxu1 }
 0x13d   :  { %v144_v30 = vadd.f32 %v400_v6, %v143_v29  ;;  %v319_v6 = vld [vmem:[#allocation3 + $0x2e0] sm:$0xff] }
 0x13e   :  { %328 = vmatpush.msrb.mxu1 %v319_v6  ;;  %382 = vmatpush.msrb.mxu3 %v319_v6  ;;  %v403_v29 = vld [vmem:[%s506_s2 + $0x4] ss:$0 sm:$0xff] }
 0x13f   :  { %v149_v31 = vmax.f32 %v144_v30, 0.0 }
 0x140   :  { %329 = vmatpush.msrb.mxu1 %v318_v8  ;;  %383 = vmatpush.msrb.mxu3 %v318_v8 }
 0x141   :  { %194 = vmatmul.f32.gmra.mxu2 %v149_v31 }
 0x142   :  { %330 = vmatpush.msrb.mxu1 %v317_v9  ;;  %384 = vmatpush.msrb.mxu3 %v317_v9 }
 0x144   :  { %331 = vmatpush.msrb.mxu1 %v316_v10  ;;  %385 = vmatpush.msrb.mxu3 %v316_v10 }
 0x146   :  { %332 = vmatpush.msrb.mxu1 %v315_v13  ;;  %386 = vmatpush.msrb.mxu3 %v315_v13 }
 0x148   :  { %333 = vmatpush.msrb.mxu1 %v314_v15  ;;  %387 = vmatpush.msrb.mxu3 %v314_v15 }
 0x14a   :  { %334 = vmatpush.msrb.mxu1 %v313_v16  ;;  %388 = vmatpush.msrb.mxu3 %v313_v16 }
 0x14c   :  { %335 = vmatpush.msrb.mxu1 %v312_v17  ;;  %389 = vmatpush.msrb.mxu3 %v312_v17 }
 0x14e   :  { %336 = vmatpush.msrb.mxu1 %v311_v20  ;;  %390 = vmatpush.msrb.mxu3 %v311_v20 }
 0x150   :  { %337 = vmatpush.msrb.mxu1 %v310_v22  ;;  %391 = vmatpush.msrb.mxu3 %v310_v22 }
 0x152   :  { %338 = vmatpush.msrb.mxu1 %v309_v26  ;;  %392 = vmatpush.msrb.mxu3 %v309_v26 }
 0x154   :  { %339 = vmatpush.msrb.mxu1 %v308_v27  ;;  %393 = vmatpush.msrb.mxu3 %v308_v27 }
 0x156   :  { %340 = vmatpush.msrb.mxu1 %v307_v28  ;;  %394 = vmatpush.msrb.mxu3 %v307_v28 }
 0x1ac   :  { %v186_v39 = vpop.f32.mrf.mxu2 }
 0x1ad   :  { %v187_v40 = vadd.f32 %v401_v35, %v186_v39 }
 0x1af   :  { %v198_v42 = vmax.f32 %v187_v40, 0.0 }
 0x1b1   :  { %237 = vmatmul.f32.vlgmr.msra.gmra.mxu3 %v198_v42  ;;  %v404_v42 = vld [vmem:[%s506_s2 + $0x5] ss:$0 sm:$0xff] }
 0x1b4   :  { %v189_v46 = vpop.f32.mrf.mxu2 }
 0x1b5   :  { %v190_v47 = vadd.f32 %v401_v35, %v189_v46 }
 0x1b7   :  { %v199_v49 = vmax.f32 %v190_v47, 0.0 }
 0x1b9   :  { %240 = vmatmul.f32.gmra.mxu3 %v199_v49 }
 0x1bc   :  { %v192_v53 = vpop.f32.mrf.mxu2 }
 0x1bd   :  { %v193_v54 = vadd.f32 %v401_v35, %v192_v53 }
 0x1bf   :  { %v200_v56 = vmax.f32 %v193_v54, 0.0 }
 0x1c1   :  { %243 = vmatmul.f32.gmra.mxu3 %v200_v56 }
 0x1c4   :  { %v195_v58 = vpop.f32.mrf.mxu2 }
 0x1c5   :  { %v196_v59 = vadd.f32 %v401_v35, %v195_v58 }
 0x1c7   :  { %v201_v60 = vmax.f32 %v196_v59, 0.0 }
 0x1c9   :  { %246 = vmatmul.f32.gmra.mxu3 %v201_v60 }
 0x234   :  { %v238_v4 = vpop.f32.mrf.mxu3 }
 0x235   :  { %v239_v5 = vadd.f32 %v402_v0, %v238_v4 }
 0x237   :  { %v250_v7 = vmax.f32 %v239_v5, 0.0 }
 0x239   :  { %289 = vmatmul.f32.vlgmr.msrb.gmra.mxu0 %v250_v7 }
 0x23c   :  { %v241_v11 = vpop.f32.mrf.mxu3 }
 0x23d   :  { %v242_v12 = vadd.f32 %v402_v0, %v241_v11 }
 0x23f   :  { %v251_v14 = vmax.f32 %v242_v12, 0.0 }
 0x241   :  { %292 = vmatmul.f32.gmra.mxu0 %v251_v14 }
 0x244   :  { %v244_v18 = vpop.f32.mrf.mxu3 }
 0x245   :  { %v245_v19 = vadd.f32 %v402_v0, %v244_v18 }
 0x247   :  { %v252_v21 = vmax.f32 %v245_v19, 0.0 }
 0x249   :  { %295 = vmatmul.f32.vlgmr.msrb.gmra.mxu2 %v252_v21 }
 0x24c   :  { %v247_v23 = vpop.f32.mrf.mxu3 }
 0x24d   :  { %v248_v24 = vadd.f32 %v402_v0, %v247_v23 }
 0x24f   :  { %v253_v25 = vmax.f32 %v248_v24, 0.0 }
 0x251   :  { %298 = vmatmul.f32.gmra.mxu2 %v253_v25 }
 0x2b6   :  { %v290_v30 = vpop.f32.mrf.mxu0 }
 0x2b7   :  { %v291_v31 = vadd.f32 %v403_v29, %v290_v30 }
 0x2b9   :  { %v302_v32 = vmax.f32 %v291_v31, 0.0 }
 0x2bb   :  { %341 = vmatmul.f32.vlgmr.msrb.gmra.mxu1 %v302_v32 }
 0x2be   :  { %v293_v33 = vpop.f32.mrf.mxu0 }
 0x2bf   :  { %v294_v34 = vadd.f32 %v403_v29, %v293_v33 }
 0x2c1   :  { %v303_v35 = vmax.f32 %v294_v34, 0.0 }
 0x2c3   :  { %344 = vmatmul.f32.gmra.mxu1 %v303_v35 }
 0x2cc   :  { %v296_v36 = vpop.f32.mrf.mxu2 }
 0x2cd   :  { %v297_v37 = vadd.f32 %v403_v29, %v296_v36 }
 0x2cf   :  { %v304_v38 = vmax.f32 %v297_v37, 0.0 }
 0x2d1   :  { %347 = vmatmul.f32.vlgmr.msrb.gmra.mxu3 %v304_v38 }
 0x2d4   :  { %v299_v39 = vpop.f32.mrf.mxu2 }
 0x2d5   :  { %v300_v40 = vadd.f32 %v403_v29, %v299_v39 }
 0x2d7   :  { %v305_v41 = vmax.f32 %v300_v40, 0.0 }
 0x2d9   :  { %350 = vmatmul.f32.gmra.mxu3 %v305_v41 }
 0x338   :  { %v342_v43 = vpop.f32.mrf.mxu1 }
 0x339   :  { %v343_v44 = vadd.f32 %v404_v42, %v342_v43 }
 0x33b   :  { %354 = vst [vmem:[%s507_s3] sm:$0xff] %v343_v44 }
 0x340   :  { %v345_v45 = vpop.f32.mrf.mxu1 }
 0x341   :  { %v346_v46 = vadd.f32 %v404_v42, %v345_v45 }
 0x343   :  { %355 = vst [vmem:[%s507_s3 + $0x8] sm:$0xff] %v346_v46 }
 0x354   :  { %v348_v47 = vpop.f32.mrf.mxu3 }
 0x355   :  { %v349_v48 = vadd.f32 %v404_v42, %v348_v47 }
 0x357   :  { %356 = vst [vmem:[%s507_s3 + $0x10] sm:$0xff] %v349_v48 }
 0x35c   :  { %v351_v49 = vpop.f32.mrf.mxu3 }
 0x35d   :  { %v352_v50 = vadd.f32 %v404_v42, %v351_v49 }
 0x35f   :  { %357 = vst [vmem:[%s507_s3 + $0x18] sm:$0xff] %v352_v50 }
 0x360   :  { %362 = vsyncpa [#allocation4], 1 }

</bundles_post_ra>
